<compile_context>
chip_gen: v7x
topology: tpu7x:2x2x1
jax: 0.10.0
libtpu: 0.0.40
codegen_flags: <defaults>
</compile_context>

<pallas_src>
import numpy as np
import jax
import jax.numpy as jnp
from jax.experimental import pallas as pl
from jax.experimental.pallas import tpu as pltpu

LOGVAR_CHANNELS = 128
EPS = 1e-4  # eps used by normalize()


def _adaptive_loss_weight_kernel(a_ref, freqs_ref, phases_ref, w_ref, out_ref):
    # a_ref:                 VMEM (TB, 1) f32  (batch tile of a_bar)
    # freqs_ref/phases_ref:  VMEM (1, C)  f32  (mean/std already folded in)
    # w_ref:                 VMEM (1, C)  f32  (weight-norm + sqrt(2) already folded in)
    # out_ref:               VMEM (TB, 1) f32
    arg = a_ref[...] * freqs_ref[...] + phases_ref[...]          # (TB, C) broadcast
    # VPU multiply + XLU lane-reduce; deliberately not routed through the MXU.
    out_ref[...] = jnp.sum(jnp.cos(arg) * w_ref[...], axis=-1, keepdims=True)


def adaptive_loss_weight_mlp(a_bar, freqs, phases, weight, a_bar_mean, a_bar_std,
                             *, block_b=512):
    """Forward pass of AdaptiveLossWeightMLP (eval mode, gain=1)."""
    a_bar = jnp.asarray(a_bar, jnp.float32)
    B = a_bar.shape[0]

    freqs = jnp.asarray(freqs, jnp.float32).reshape(1, -1)
    C = freqs.shape[-1]
    phases = jnp.asarray(phases, jnp.float32).reshape(1, C)
    weight = jnp.asarray(weight, jnp.float32).reshape(1, C)
    mean = jnp.asarray(a_bar_mean, jnp.float32)
    std = jnp.asarray(a_bar_std, jnp.float32)

    # --- fold c_noise = (a - mean)/std into the Fourier params (batch-invariant) ---
    freqs_eff = freqs / std
    phases_eff = phases - mean * freqs_eff

    # --- hoist weight normalization + MPFourier sqrt(2) gain into one scaled weight ---
    #   w_n   = w / (eps + ||w||_2 / sqrt(C))      (normalize over fan-in)
    #   w_out = w_n * (gain / sqrt(C)),  gain = 1
    #   out   = sqrt(2) * sum(cos(arg) * w_out)  ==  sum(cos(arg) * w_eff)
    inv_sqrt_c = np.float32(1.0 / np.sqrt(C))
    norm = jnp.sqrt(jnp.sum(weight * weight))
    scale = np.float32(np.sqrt(2.0)) * inv_sqrt_c / (np.float32(EPS) + norm * inv_sqrt_c)
    w_eff = weight * scale                                        # (1, C), one-time op

    # --- batch tiling: sublane-aligned row tile, grid over batch ---
    tb = block_b if B >= block_b else max(8, int(np.ceil(B / 8)) * 8)
    n_tiles = int(np.ceil(B / tb))
    Bp = n_tiles * tb
    a2 = a_bar.reshape(B, 1)
    if Bp != B:
        a2 = jnp.pad(a2, ((0, Bp - B), (0, 0)))

    out = pl.pallas_call(
        _adaptive_loss_weight_kernel,
        out_shape=jax.ShapeDtypeStruct((Bp, 1), jnp.float32),
        grid=(n_tiles,),
        in_specs=[
            pl.BlockSpec((tb, 1), lambda i: (i, 0)),   # a_bar tile (streams)
            pl.BlockSpec((1, C), lambda i: (0, 0)),    # freqs'   (VMEM-resident)
            pl.BlockSpec((1, C), lambda i: (0, 0)),    # phases'  (VMEM-resident)
            pl.BlockSpec((1, C), lambda i: (0, 0)),    # w_eff    (VMEM-resident)
        ],
        out_specs=pl.BlockSpec((tb, 1), lambda i: (i, 0)),
        compiler_params=pltpu.CompilerParams(
            dimension_semantics=("parallel",)),        # shards over 2 TCs on v7x
    )(a2, freqs_eff, phases_eff, w_eff)

    return jnp.squeeze(out[:B])   # matches PyTorch .squeeze()


def _reference(a_bar, freqs, phases, weight, a_bar_mean, a_bar_std):
    # Pure-JAX reference following the original (unfolded) PyTorch math.
    c = (a_bar - a_bar_mean) / a_bar_std
    y = jnp.cos(c[:, None] * freqs[None, :] + phases[None, :]) * np.sqrt(2.0)
    C = freqs.shape[0]
    norm = jnp.sqrt(jnp.sum(weight * weight))
    w_eff = weight / (EPS + norm / np.sqrt(C)) / np.sqrt(C)
    return jnp.squeeze(y @ w_eff.reshape(C, 1))


if __name__ == "__main__":
    key = jax.random.PRNGKey(0)
    k_f, k_p, k_w, k_a, k_a2 = jax.random.split(key, 5)

    # Synthetic noise scheduler: DDPM-style alphas_cumprod for mean/std scalars.
    betas = jnp.linspace(1e-4, 2e-2, 1000, dtype=jnp.float32)
    alphas_cumprod = jnp.cumprod(1.0 - betas)
    a_bar_mean = jnp.mean(alphas_cumprod)
    a_bar_std = jnp.std(alphas_cumprod)

    # Deterministic parameter init (shapes from the module __init__).
    freqs = 2.0 * np.pi * jax.random.normal(k_f, (LOGVAR_CHANNELS,), jnp.float32)
    phases = 2.0 * np.pi * jax.random.uniform(k_p, (LOGVAR_CHANNELS,), jnp.float32)
    weight = jax.random.normal(k_w, (1, LOGVAR_CHANNELS), jnp.float32)

    # Small batch (single grid step).
    B = 8
    a_bar = jax.random.uniform(k_a, (B,), jnp.float32, minval=0.01, maxval=0.99)
    out = jax.block_until_ready(
        adaptive_loss_weight_mlp(a_bar, freqs, phases, weight, a_bar_mean, a_bar_std))
    ref = _reference(a_bar, freqs, phases, weight, a_bar_mean, a_bar_std)
    assert out.shape == (B,)
    # Scalar-fold reordering shifts results at the ~last-ulp level -> relaxed tolerance.
    assert np.allclose(np.asarray(out), np.asarray(ref), atol=1e-4, rtol=1e-4)

    # Ragged batch exercising padding + multi-tile "parallel" grid.
    B2 = 300
    a_bar2 = jax.random.uniform(k_a2, (B2,), jnp.float32, minval=0.01, maxval=0.99)
    out2 = jax.block_until_ready(
        adaptive_loss_weight_mlp(a_bar2, freqs, phases, weight, a_bar_mean, a_bar_std,
                                 block_b=128))
    ref2 = _reference(a_bar2, freqs, phases, weight, a_bar_mean, a_bar_std)
    assert out2.shape == (B2,)
    assert np.allclose(np.asarray(out2), np.asarray(ref2), atol=1e-4, rtol=1e-4)

    print("KERNEL_OK")
</pallas_src>

<mosaic_0001>
module attributes {stable_mosaic.version = 11 : i64} {
  func.func @_adaptive_loss_weight_kernel(%arg0: i32, %arg1: memref<8x1xf32, #tpu.memory_space<vmem>>, %arg2: memref<1x128xf32, #tpu.memory_space<vmem>>, %arg3: memref<1x128xf32, #tpu.memory_space<vmem>>, %arg4: memref<1x128xf32, #tpu.memory_space<vmem>>, %arg5: memref<8x1xf32, #tpu.memory_space<vmem>>) attributes {dimension_semantics = [#tpu.dimension_semantics<parallel>], iteration_bounds = array<i64: 1>, scalar_prefetch = 0 : i64, scratch_operands = 0 : i64, tpu.core_type = #tpu.core_type<tc>, window_params = [{transform_indices = @transform_0, window_bounds = array<i64: 8, 1>}, {pipeline_mode = #tpu.pipeline_mode<synchronous>, transform_indices = @transform_1, window_bounds = array<i64: 1, 128>}, {pipeline_mode = #tpu.pipeline_mode<synchronous>, transform_indices = @transform_2, window_bounds = array<i64: 1, 128>}, {pipeline_mode = #tpu.pipeline_mode<synchronous>, transform_indices = @transform_3, window_bounds = array<i64: 1, 128>}, {transform_indices = @transform_4, window_bounds = array<i64: 8, 1>}]} {
    %c0 = arith.constant 0 : index
    %c0_0 = arith.constant 0 : index
    %0 = vector.load %arg1[%c0, %c0_0] : memref<8x1xf32, #tpu.memory_space<vmem>>, vector<8x1xf32>
    %c0_1 = arith.constant 0 : index
    %c0_2 = arith.constant 0 : index
    %1 = vector.load %arg2[%c0_1, %c0_2] : memref<1x128xf32, #tpu.memory_space<vmem>>, vector<1x128xf32>
    %2 = vector.broadcast %0 : vector<8x1xf32> to vector<8x128xf32>
    %3 = vector.broadcast %1 : vector<1x128xf32> to vector<8x128xf32>
    %4 = arith.mulf %2, %3 : vector<8x128xf32>
    %c0_3 = arith.constant 0 : index
    %c0_4 = arith.constant 0 : index
    %5 = vector.load %arg3[%c0_3, %c0_4] : memref<1x128xf32, #tpu.memory_space<vmem>>, vector<1x128xf32>
    %6 = vector.broadcast %5 : vector<1x128xf32> to vector<8x128xf32>
    %7 = arith.addf %4, %6 : vector<8x128xf32>
    %8 = math.cos %7 : vector<8x128xf32>
    %c0_5 = arith.constant 0 : index
    %c0_6 = arith.constant 0 : index
    %9 = vector.load %arg4[%c0_5, %c0_6] : memref<1x128xf32, #tpu.memory_space<vmem>>, vector<1x128xf32>
    %10 = vector.broadcast %9 : vector<1x128xf32> to vector<8x128xf32>
    %11 = arith.mulf %8, %10 : vector<8x128xf32>
    %cst = arith.constant dense<0.000000e+00> : vector<8xf32>
    %12 = vector.multi_reduction <add>, %11, %cst [1] : vector<8x128xf32> to vector<8xf32>
    %13 = vector.shape_cast %12 : vector<8xf32> to vector<8x1xf32>
    %c0_7 = arith.constant 0 : index
    %c0_8 = arith.constant 0 : index
    %14 = vector.load %arg5[%c0_7, %c0_8] : memref<8x1xf32, #tpu.memory_space<vmem>>, vector<8x1xf32>
    tpu.vector_store %arg5[%c0_7, %c0_8], %13 {strides = array<i32>} : memref<8x1xf32, #tpu.memory_space<vmem>>, vector<8x1xf32>,
    return
  }
  func.func @transform_0(%arg0: i32) -> (i32, i32) {
    %c0_i32 = arith.constant 0 : i32
    %c0_i32_0 = arith.constant 0 : i32
    return %arg0, %c0_i32 : i32, i32
  }
  func.func @transform_1(%arg0: i32) -> (i32, i32) {
    %c0_i32 = arith.constant 0 : i32
    %c0_i32_0 = arith.constant 0 : i32
    %c0_i32_1 = arith.constant 0 : i32
    return %c0_i32, %c0_i32_0 : i32, i32
  }
  func.func @transform_2(%arg0: i32) -> (i32, i32) {
    %c0_i32 = arith.constant 0 : i32
    %c0_i32_0 = arith.constant 0 : i32
    %c0_i32_1 = arith.constant 0 : i32
    return %c0_i32, %c0_i32_0 : i32, i32
  }
  func.func @transform_3(%arg0: i32) -> (i32, i32) {
    %c0_i32 = arith.constant 0 : i32
    %c0_i32_0 = arith.constant 0 : i32
    %c0_i32_1 = arith.constant 0 : i32
    return %c0_i32, %c0_i32_0 : i32, i32
  }
  func.func @transform_4(%arg0: i32) -> (i32, i32) {
    %c0_i32 = arith.constant 0 : i32
    %c0_i32_0 = arith.constant 0 : i32
    return %arg0, %c0_i32 : i32, i32
  }
}

</mosaic_0001>

<bundles_post_ra>
// kernel: tpu_custom_call.1
= control target key start
LH: loop header
LB: loop body
LE: loop exit
PB: predicated region body
PF: predicated region fallthrough
CT: control target
= control target key end

     0   :  { %v181_v0 = vmov 0   ;;  %v182_v18 = vmov 2102212464   ;;  %v183_v20 = vmov 920167782   ;;  %vm152_vm13 = vcmask 7168   ;;  %s249_s0 = inlined_call_operand.vmem [shape: f32[8,1], index: 0, kind: input, shape index: {}]   ;;  %s250_s1 = inlined_call_operand.vmem [shape: f32[1,128], index: 1, kind: input, shape index: {}]   ;;  %s251_s2 = inlined_call_operand.vmem [shape: f32[1,128], index: 2, kind: input, shape index: {}]   ;;  %s252_s3 = inlined_call_operand.vmem [shape: f32[1,128], index: 3, kind: input, shape index: {}]   ;;  %s253_s4 = inlined_call_operand.vmem [shape: f32[8,1], index: 4, kind: output, shape index: {}]  }
   0x1   :  { %176 = vset.pattern.permute.xlu0 %v181_v0  ;;  %v17_v1 = vld [vmem:[%s249_s0] sm:$0xff]  ;;  %v184_v24 = vmov 1326507024   ;;  %v185_v26 = vmov 683565275  }
   0x2   :  { %21 = vperm.xlu0 %176, %v17_v1   ;;  %v158_v2 = vld [vmem:[%s250_s1] ss:$0 sm:$0xff]  ;;  %v186_v28 = vmov 2475754826   ;;  %v187_v31 = vmov 2131351028  }
   0x3   :  { %v159_v3 = vld [vmem:[%s251_s2] ss:$0 sm:$0xff] }
  0x81   :  { %v22_v4 = vpop.permute.xlu0 %21 }
  0x82   :  { %v30_v5 = vmul.f32 %v158_v2, %v22_v4 }
  0x84   :  { %v222_v6 = vadd.f32 %v159_v3, %v30_v5 }
  0x86   :  { %v42_v7 = vand.u32 2139095040, %v222_v6  ;;  %v39_v8 = vand.u32 2147483647, %v222_v6  ;;  %vm41_vm7 = vcmp.lt.s32.totalorder %v222_v6, 0  ;;  %vm131_vm12 = vweird.f32 %v222_v6 }
  0x88   :  { %v43_v9 = vshrl.u32 %v42_v7, 23  ;;  %v46_v11 = vand.u32 8388607, %v39_v8  ;;  %vm40_vm8 = vcmp.le.f32.partialorder %v39_v8, 0.7853982 }
  0x89   :  { %v164_v8 = vld [vmem:[%s252_s3] ss:$0 sm:$0xff] }
  0x8a   :  { %v160_v10 = vadd.s32 4294967169, %v43_v9  ;;  %v47_v14 = vor.u32 8388608, %v46_v11 }
  0x8c   :  { %v49_v12 = vadd.s32 1, %v160_v10  ;;  %v87_v22 = vshll.u32 %v47_v14, 8 }
  0x8e   :  { %vm50_vm0 = vcmp.gt.s32.totalorder %v49_v12, 0 }
  0x8f   :  { %v51_v13 = vsel %vm50_vm0, %v49_v12, 0 }
  0x90   :  { %v53_v15 = vand.u32 31, %v51_v13  ;;  %v52_v16 = vshrl.u32 %v51_v13, 5 }
  0x92   :  { %v54_v17 = vsub.s32 32, %v53_v15  ;;  %v65_v19 = vshll.u32 %v182_v18, %v53_v15  ;;  %v68_v21 = vshll.u32 %v183_v20, %v53_v15  ;;  %v56_v27 = vshll.u32 %v185_v26, %v53_v15 }
  0x93   :  { %v59_v30 = vshll.u32 %v186_v28, %v53_v15  ;;  %v62_v33 = vshll.u32 %v187_v31, %v53_v15  ;;  %vm74_vm1 = vcmp.lt.s32.totalorder %v52_v16, 4  ;;  %vm71_vm2 = vcmp.lt.s32.totalorder %v52_v16, 1 }
  0x94   :  { %v66_v23 = vshrl.u32 %v183_v20, %v54_v17  ;;  %v69_v25 = vshrl.u32 %v184_v24, %v54_v17  ;;  %v57_v29 = vshrl.u32 %v186_v28, %v54_v17  ;;  %v60_v32 = vshrl.u32 %v187_v31, %v54_v17 }
  0x95   :  { %v63_v34 = vshrl.u32 %v182_v18, %v54_v17  ;;  %v55_v38 = vshrl.u32 %v185_v26, %v54_v17  ;;  %vm72_vm3 = vcmp.lt.s32.totalorder %v52_v16, 2  ;;  %vm73_vm4 = vcmp.lt.s32.totalorder %v52_v16, 3 }
  0x96   :  { %v67_v35 = vor.u32 %v66_v23, %v65_v19  ;;  %v70_v36 = vor.u32 %v69_v25, %v68_v21  ;;  %v58_v37 = vor.u32 %v57_v29, %v56_v27  ;;  %v61_v39 = vor.u32 %v60_v32, %v59_v30 }
  0x97   :  { %v64_v40 = vor.u32 %v63_v34, %v62_v33 }
  0x98   :  { %v80_v41 = vsel %vm74_vm1, %v67_v35, 920167782  ;;  %v84_v42 = vsel %vm74_vm1, %v70_v36, 1326507024  ;;  %v79_v44 = vsel %vm71_vm2, %v58_v37, %v61_v39  ;;  %v75_v47 = vsel %vm71_vm2, %v55_v38, %v58_v37 }
  0x99   :  { %v76_v43 = vsel %vm74_vm1, %v64_v40, 2102212464  ;;  %v81_v45 = vsel %vm73_vm4, %v64_v40, %v80_v41  ;;  %v83_v46 = vsel %vm71_vm2, %v61_v39, %v64_v40  ;;  %v85_v50 = vsel %vm73_vm4, %v67_v35, %v84_v42 }
  0x9a   :  { %v77_v48 = vsel %vm73_vm4, %v61_v39, %v76_v43  ;;  %v82_v49 = vsel %vm72_vm3, %v79_v44, %v81_v45  ;;  %v86_v51 = vsel %vm72_vm3, %v83_v46, %v85_v50 }
  0x9b   :  { %v228_v52 = vmul.u32.u64.low %v87_v22, %v82_v49  ;;  %v229_v53 = vmul.u32.u64.high %v87_v22, %v82_v49, %v228_v52  ;;  %v231_v54 = vmul.u32.u64.low %v87_v22, %v86_v51  ;;  %v232_v55 = vmul.u32.u64.high %v87_v22, %v86_v51, %v231_v54 }
  0x9c   :  { %v78_v56 = vsel %vm72_vm3, %v75_v47, %v77_v48 }
  0x9d   :  { %v97_v57 = vadd.s32 1, %v229_v53  ;;  %v94_v58 = vmul.u32 %v87_v22, %v78_v56  ;;  %vm96_vm5 = vc.u32 %v232_v55, %v228_v52  ;;  %v95_v7 = vadd.s32 %v228_v52, %v232_v55 }
  0x9f   :  { %v98_v59 = vsel %vm96_vm5, %v97_v57, %v229_v53 }
  0xa0   :  { %v99_v60 = vadd.s32 %v98_v59, %v94_v58 }
  0xa2   :  { %v100_v61 = vadd.s32 536870912, %v99_v60 }
  0xa4   :  { %v101_v62 = vshrl.u32 %v100_v61, 30 }
  0xa6   :  { %v102_v63 = vshll.u32 %v101_v62, 30  ;;  %v125_v22 = vsub.s32 4, %v101_v62 }
  0xa8   :  { %v103_v0 = vsub.s32 %v99_v60, %v102_v63  ;;  %v126_v24 = vsel %vm41_vm7, %v125_v22, %v101_v62 }
  0xa9   :  { %v128_v25 = vsel %vm40_vm8, 0, %v126_v24 }
  0xaa   :  { %v105_v1 = vsub.s32 0, %v103_v0  ;;  %v132_v26 = vand.u32 3, %v128_v25 }
  0xac   :  { %v161_v2 = vmin.u32 %v105_v1, %v103_v0  ;;  %vm137_vm9 = vcmp.eq.s32.totalorder %v132_v26, 2  ;;  %vm134_vm10 = vcmp.eq.s32.totalorder %v132_v26, 0  ;;  %vm133_vm11 = vcmp.lt.s32.totalorder %v132_v26, 2 }
  0xae   :  { %v107_v3 = vclz %v161_v2 }
  0xb0   :  { %v162_v4 = vadd.s32 4294967294, %v107_v3 }
  0xb2   :  { %vm163_vm6 = vcmp.lt.s32.totalorder %v162_v4, 0 }
  0xb3   :  { %v110_v5 = vsel %vm163_vm6, 0, %v162_v4 }
  0xb4   :  { %v111_v9 = vsub.s32 32, %v110_v5  ;;  %v115_v10 = vsub.s32 4294967266, %v110_v5  ;;  %v112_v11 = vshll.u32 %v103_v0, %v110_v5 }
  0xb6   :  { %v113_v12 = vshrl.u32 %v95_v7, %v111_v9  ;;  %v116_v13 = vadd.s32 127, %v115_v10 }
  0xb8   :  { %v114_v14 = vor.u32 %v113_v12, %v112_v11  ;;  %v117_v15 = vshll.u32 %v116_v13, 23 }
  0xba   :  { %v118_v16 = vor.u32 4788187, %v117_v15  ;;  %v121_v18 = vcvt.s32.f32 %v114_v14 }
  0xbc   :  { %v119_v17 = vand.u32 2147483647, %v118_v16 }
  0xbe   :  { %v122_v19 = vmul.f32 %v121_v18, %v119_v17 }
  0xc0   :  { %v123_v20 = vxor.u32 2147483648, %v122_v19 }
  0xc2   :  { %v124_v21 = vsel %vm41_vm7, %v123_v20, %v122_v19 }
  0xc3   :  { %v127_v23 = vsel %vm40_vm8, %v222_v6, %v124_v21 }
  0xc4   :  { %177 = vcosq.f32 %v127_v23 }
  0xc5   :  { %179 = vsinq.f32 %v127_v23 }
  0xce   :  { %v178_v27 = vpop.eup %177 }
  0xcf   :  { %v180_v28 = vpop.eup %179  ;;  %v138_v29 = vxor.u32 2147483648, %v178_v27 }
  0xd0   :  { %v135_v30 = vxor.u32 2147483648, %v180_v28 }
  0xd1   :  { %v139_v31 = vsel %vm137_vm9, %v138_v29, %v180_v28 }
  0xd2   :  { %v136_v32 = vsel %vm134_vm10, %v178_v27, %v135_v30 }
  0xd3   :  { %v140_v33 = vsel %vm133_vm11, %v136_v32, %v139_v31 }
  0xd4   :  { %v141_v34 = vsel %vm131_vm12, nan, %v140_v33 }
  0xd5   :  { %v149_v35 = vmul.f32 %v164_v8, %v141_v34 }
  0xd7   :  { %150 = vadd.xlane.f32.xlu0 %v149_v35 }
 0x164   :  { %v151_v36 = vpop.xlane.xlu0 %150 }
 0x165   :  { %153 = vst.msk [vmem:[%s253_s4] sm:$0xff] %vm152_vm13, %v151_v36 }

</bundles_post_ra>
